<compile_context>
chip_gen: v5e
topology: v5e:2x2
jax: 0.10.0
libtpu: 0.0.40
codegen_flags: <defaults>
</compile_context>

<pallas_src>
import math

import jax
import jax.numpy as jnp
from jax.experimental import pallas as pl
from jax.experimental.pallas import tpu as pltpu

LANE = 128
SUBLANE = 8


def _round_up(v, m):
    return ((v + m - 1) // m) * m


def make_mlp_kernel(n_layers, out_pads, out_dim):
    """Fused MLP kernel over one (TILE_N, in_dim) row-tile.

    refs = (x_ref, w0_ref, ..., w{L-1}_ref, b_packed_ref, o_ref)
      * x_ref: bf16 (tile_n, in_dim)            -- feature dim unpadded.
      * w_i:   bf16 (in_dim_i, out_pad_i)       -- transposed, zero lane-padded.
      * b_packed: f32 (L, max_out_pad)          -- zero-padded lanes.
      * o_ref: (tile_n, out_dim)                -- unpadded last dim.
    """

    def kernel(*refs):
        x_ref = refs[0]
        w_refs = refs[1:1 + n_layers]
        b_ref = refs[1 + n_layers]
        o_ref = refs[-1]

        h = x_ref[...]                                       # bf16 (tile_n, in_dim)
        for i in range(n_layers):                            # unrolled at trace time
            w = w_refs[i][...]                               # bf16 (in, out_pad)
            acc = jnp.dot(h, w, preferred_element_type=jnp.float32)   # MXU, f32 acc
            b = b_ref[i:i + 1, :out_pads[i]]                 # static slice -> (1, out_pad) f32
            z = acc + b                                      # f32 bias add (VPU)
            if i < n_layers - 1:
                h = jnp.maximum(z, 0.0).astype(jnp.bfloat16)  # ReLU f32, bf16 between layers
            else:
                # Unpadded writeback: only the real out_dim lanes hit HBM.
                o_ref[...] = z[:, :out_dim].astype(o_ref.dtype)

    return kernel


def _vmem_budget_bytes(w_padded, b_packed, tile_n, in_dim, out_dim, max_out_pad):
    # Resident weights/biases are double-buffered by the default pipeline even
    # with a constant index_map, so count them twice; add tile + activation
    # headroom; clamp to 64 MiB (v7x per-TC physical VMEM).
    w_bytes = sum(2 * int(w.size) * w.dtype.itemsize for w in w_padded)
    b_bytes = 2 * int(b_packed.size) * b_packed.dtype.itemsize
    x_bytes = 2 * tile_n * in_dim * 2          # bf16 x tile, double buffered
    o_bytes = 2 * tile_n * out_dim * 4         # output tile, double buffered
    act_bytes = 6 * tile_n * max_out_pad * 4   # intermediates / relayout headroom
    total = w_bytes + b_bytes + x_bytes + o_bytes + act_bytes
    return int(min(max(2 * total, 32 * 1024 * 1024), 64 * 1024 * 1024))


def deep_gcn_forward(x, weights_pt, biases_pt, data_dim, num_kernels, tile_n=1024):
    """x: (N, in_dim) f32.
    weights_pt[i]: (out_i, in_i) (PyTorch nn.Linear layout).  biases_pt[i]: (out_i,).
    Returns out.reshape(-1, data_dim, num_kernels), matching the PyTorch module."""
    n_layers = len(weights_pt)
    N, in_dim = x.shape
    out_dim = weights_pt[-1].shape[0]

    # Lane-dense padded output dims per layer (multiples of 128). Input dims of
    # each weight match the (unpadded) output width of the previous layer,
    # except layer 0 whose input dim stays the raw in_dim (block == full dim).
    in_dims = [in_dim] + [_round_up(w.shape[0], LANE) for w in weights_pt[:-1]]
    out_pads = [_round_up(w.shape[0], LANE) for w in weights_pt]
    max_out_pad = max(out_pads)

    # Pad + transpose weights to (in_dim_i, out_pad_i); bf16 for the MXU.
    w_padded = []
    for w, ip, op in zip(weights_pt, in_dims, out_pads):
        wt = jnp.transpose(w).astype(jnp.float32)            # (in, out)
        wt = jnp.pad(wt, ((0, ip - wt.shape[0]), (0, op - wt.shape[1])))
        w_padded.append(wt.astype(jnp.bfloat16))

    # Pack all biases into one f32 (L, max_out_pad) buffer (zero padded lanes).
    b_packed = jnp.zeros((n_layers, max_out_pad), dtype=jnp.float32)
    for i, b in enumerate(biases_pt):
        b_packed = b_packed.at[i, :b.shape[0]].set(b.astype(jnp.float32))

    # Row tiling: TILE_N multiple of 8, clamped for small N; pad rows only.
    tile_n = max(SUBLANE, min(tile_n, _round_up(N, SUBLANE)))
    tile_n = _round_up(tile_n, SUBLANE)
    n_pad = _round_up(N, tile_n)

    # bf16 input stream, feature dim left unpadded (no extra lane-pad pass).
    x_p = jnp.pad(x.astype(jnp.bfloat16), ((0, n_pad - N), (0, 0)))

    grid = (n_pad // tile_n,)

    in_specs = [pl.BlockSpec((tile_n, in_dim), lambda i: (i, 0))]
    for wp in w_padded:
        in_specs.append(pl.BlockSpec(wp.shape, lambda i: (0, 0)))    # VMEM-resident
    in_specs.append(pl.BlockSpec(b_packed.shape, lambda i: (0, 0)))  # VMEM-resident

    vmem_limit = _vmem_budget_bytes(w_padded, b_packed, tile_n, in_dim,
                                    out_dim, max_out_pad)

    out = pl.pallas_call(
        make_mlp_kernel(n_layers, out_pads, out_dim),
        out_shape=jax.ShapeDtypeStruct((n_pad, out_dim), x.dtype),
        grid=grid,
        in_specs=in_specs,
        out_specs=pl.BlockSpec((tile_n, out_dim), lambda i: (i, 0)),
        compiler_params=pltpu.CompilerParams(
            dimension_semantics=("parallel",),
            vmem_limit_bytes=vmem_limit,
        ),
    )(x_p, *w_padded, b_packed)

    out = out[:N]                               # strip row padding only
    return out.reshape(-1, data_dim, num_kernels)


def xavier_uniform(key, fan_in, fan_out, dtype=jnp.float32):
    limit = math.sqrt(6.0 / (fan_in + fan_out))
    # PyTorch weight shape is (out, in).
    return jax.random.uniform(key, (fan_out, fan_in), dtype=dtype,
                              minval=-limit, maxval=limit)


def bias_default(key, fan_in, fan_out, dtype=jnp.float32):
    # PyTorch nn.Linear default bias init: U(-1/sqrt(fan_in), 1/sqrt(fan_in)).
    bound = 1.0 / math.sqrt(fan_in) if fan_in > 0 else 0.0
    return jax.random.uniform(key, (fan_out,), dtype=dtype,
                              minval=-bound, maxval=bound)


if __name__ == "__main__":
    # Small deterministic config consistent with the module.
    h_nodes = 32
    num_layers = 1
    data_dim = 2
    in_dim = 4
    num_kernels = 2
    out_dim = data_dim * num_kernels
    N = 16  # batch of points

    key = jax.random.PRNGKey(0)
    keys = jax.random.split(key, 16)

    # Layer dims: in_dim -> h_nodes, [h_nodes -> h_nodes]*num_layers, h_nodes -> out_dim
    dims = [(in_dim, h_nodes)] + [(h_nodes, h_nodes)] * num_layers + [(h_nodes, out_dim)]

    weights_pt = []   # PyTorch layout: (out, in)
    biases_pt = []    # (out,)
    k_idx = 0
    for (fi, fo) in dims:
        weights_pt.append(xavier_uniform(keys[k_idx], fi, fo)); k_idx += 1
        biases_pt.append(bias_default(keys[k_idx], fi, fo));    k_idx += 1

    x = jax.random.normal(keys[k_idx], (N, in_dim), dtype=jnp.float32)

    out = deep_gcn_forward(x, weights_pt, biases_pt, data_dim, num_kernels)
    out = jax.block_until_ready(out)

    # Pure-JAX f32 reference (same math as the PyTorch forward).
    h = x
    for i, (w, b) in enumerate(zip(weights_pt, biases_pt)):
        h = h @ jnp.transpose(w) + b
        if i < len(weights_pt) - 1:
            h = jnp.maximum(h, 0.0)
    ref = h.reshape(-1, data_dim, num_kernels)

    assert out.shape == ref.shape, f"shape mismatch: {out.shape} vs {ref.shape}"
    # Kernel uses bf16 MXU operands / bf16 input stream with f32 accumulation
    # -> loose tolerance vs the f32 reference.
    assert jnp.allclose(out, ref, atol=5e-2, rtol=5e-2), "mismatch vs reference"

    print("KERNEL_OK")
</pallas_src>

<mosaic_0001>
module attributes {stable_mosaic.version = 11 : i64} {
  func.func @kernel(%arg0: i32, %arg1: memref<16x4xbf16, #tpu.memory_space<vmem>>, %arg2: memref<4x128xbf16, #tpu.memory_space<vmem>>, %arg3: memref<128x128xbf16, #tpu.memory_space<vmem>>, %arg4: memref<128x128xbf16, #tpu.memory_space<vmem>>, %arg5: memref<3x128xf32, #tpu.memory_space<vmem>>, %arg6: memref<16x4xf32, #tpu.memory_space<vmem>>) attributes {dimension_semantics = [#tpu.dimension_semantics<parallel>], iteration_bounds = array<i64: 1>, scalar_prefetch = 0 : i64, scratch_operands = 0 : i64, tpu.core_type = #tpu.core_type<tc>, window_params = [{transform_indices = @transform_0, window_bounds = array<i64: 16, 4>}, {pipeline_mode = #tpu.pipeline_mode<synchronous>, transform_indices = @transform_1, window_bounds = array<i64: 4, 128>}, {pipeline_mode = #tpu.pipeline_mode<synchronous>, transform_indices = @transform_2, window_bounds = array<i64: 128, 128>}, {pipeline_mode = #tpu.pipeline_mode<synchronous>, transform_indices = @transform_3, window_bounds = array<i64: 128, 128>}, {pipeline_mode = #tpu.pipeline_mode<synchronous>, transform_indices = @transform_4, window_bounds = array<i64: 3, 128>}, {transform_indices = @transform_5, window_bounds = array<i64: 16, 4>}]} {
    %c0 = arith.constant 0 : index
    %c0_0 = arith.constant 0 : index
    %0 = vector.load %arg1[%c0, %c0_0] : memref<16x4xbf16, #tpu.memory_space<vmem>>, vector<16x4xbf16>
    %c0_1 = arith.constant 0 : index
    %c0_2 = arith.constant 0 : index
    %1 = vector.load %arg2[%c0_1, %c0_2] : memref<4x128xbf16, #tpu.memory_space<vmem>>, vector<4x128xbf16>
    %cst = arith.constant dense<0.000000e+00> : vector<16x128xf32>
    %2 = tpu.matmul %0, %1, %cst {dimension_numbers = #tpu.dot_dimension_numbers<[1], [0], [0], [1], [0, 0, 1, 1], [], []>} : vector<16x4xbf16>, vector<4x128xbf16>, vector<16x128xf32> -> vector<16x128xf32>
    %c0_3 = arith.constant 0 : index
    %c0_4 = arith.constant 0 : index
    %3 = vector.load %arg5[%c0_3, %c0_4] : memref<3x128xf32, #tpu.memory_space<vmem>>, vector<1x128xf32>
    %4 = vector.broadcast %3 : vector<1x128xf32> to vector<16x128xf32>
    %5 = arith.addf %2, %4 : vector<16x128xf32>
    %cst_5 = arith.constant 0.000000e+00 : f32
    %6 = vector.broadcast %cst_5 : f32 to vector<16x128xf32>
    %7 = arith.maximumf %5, %6 : vector<16x128xf32>
    %8 = arith.truncf %7 : vector<16x128xf32> to vector<16x128xbf16>
    %c0_6 = arith.constant 0 : index
    %c0_7 = arith.constant 0 : index
    %9 = vector.load %arg3[%c0_6, %c0_7] : memref<128x128xbf16, #tpu.memory_space<vmem>>, vector<128x128xbf16>
    %cst_8 = arith.constant dense<0.000000e+00> : vector<16x128xf32>
    %10 = tpu.matmul %8, %9, %cst_8 {dimension_numbers = #tpu.dot_dimension_numbers<[1], [0], [0], [1], [0, 0, 1, 1], [], []>} : vector<16x128xbf16>, vector<128x128xbf16>, vector<16x128xf32> -> vector<16x128xf32>
    %c1 = arith.constant 1 : index
    %c0_9 = arith.constant 0 : index
    %11 = vector.load %arg5[%c1, %c0_9] : memref<3x128xf32, #tpu.memory_space<vmem>>, vector<1x128xf32>
    %12 = vector.broadcast %11 : vector<1x128xf32> to vector<16x128xf32>
    %13 = arith.addf %10, %12 : vector<16x128xf32>
    %cst_10 = arith.constant 0.000000e+00 : f32
    %14 = vector.broadcast %cst_10 : f32 to vector<16x128xf32>
    %15 = arith.maximumf %13, %14 : vector<16x128xf32>
    %16 = arith.truncf %15 : vector<16x128xf32> to vector<16x128xbf16>
    %c0_11 = arith.constant 0 : index
    %c0_12 = arith.constant 0 : index
    %17 = vector.load %arg4[%c0_11, %c0_12] : memref<128x128xbf16, #tpu.memory_space<vmem>>, vector<128x128xbf16>
    %cst_13 = arith.constant dense<0.000000e+00> : vector<16x128xf32>
    %18 = tpu.matmul %16, %17, %cst_13 {dimension_numbers = #tpu.dot_dimension_numbers<[1], [0], [0], [1], [0, 0, 1, 1], [], []>} : vector<16x128xbf16>, vector<128x128xbf16>, vector<16x128xf32> -> vector<16x128xf32>
    %c2 = arith.constant 2 : index
    %c0_14 = arith.constant 0 : index
    %19 = vector.load %arg5[%c2, %c0_14] : memref<3x128xf32, #tpu.memory_space<vmem>>, vector<1x128xf32>
    %20 = vector.broadcast %19 : vector<1x128xf32> to vector<16x128xf32>
    %21 = arith.addf %18, %20 : vector<16x128xf32>
    %22 = vector.extract_strided_slice %21 {offsets = [0, 0], sizes = [16, 4], strides = [1, 1]} : vector<16x128xf32> to vector<16x4xf32>
    %c0_15 = arith.constant 0 : index
    %c0_16 = arith.constant 0 : index
    %23 = vector.load %arg6[%c0_15, %c0_16] : memref<16x4xf32, #tpu.memory_space<vmem>>, vector<16x4xf32>
    tpu.vector_store %arg6[%c0_15, %c0_16], %22 {strides = array<i32>} : memref<16x4xf32, #tpu.memory_space<vmem>>, vector<16x4xf32>,
    return
  }
  func.func @transform_0(%arg0: i32) -> (i32, i32) {
    %c0_i32 = arith.constant 0 : i32
    %c0_i32_0 = arith.constant 0 : i32
    return %arg0, %c0_i32 : i32, i32
  }
  func.func @transform_1(%arg0: i32) -> (i32, i32) {
    %c0_i32 = arith.constant 0 : i32
    %c0_i32_0 = arith.constant 0 : i32
    %c0_i32_1 = arith.constant 0 : i32
    return %c0_i32, %c0_i32_0 : i32, i32
  }
  func.func @transform_2(%arg0: i32) -> (i32, i32) {
    %c0_i32 = arith.constant 0 : i32
    %c0_i32_0 = arith.constant 0 : i32
    %c0_i32_1 = arith.constant 0 : i32
    return %c0_i32, %c0_i32_0 : i32, i32
  }
  func.func @transform_3(%arg0: i32) -> (i32, i32) {
    %c0_i32 = arith.constant 0 : i32
    %c0_i32_0 = arith.constant 0 : i32
    %c0_i32_1 = arith.constant 0 : i32
    return %c0_i32, %c0_i32_0 : i32, i32
  }
  func.func @transform_4(%arg0: i32) -> (i32, i32) {
    %c0_i32 = arith.constant 0 : i32
    %c0_i32_0 = arith.constant 0 : i32
    %c0_i32_1 = arith.constant 0 : i32
    return %c0_i32, %c0_i32_0 : i32, i32
  }
  func.func @transform_5(%arg0: i32) -> (i32, i32) {
    %c0_i32 = arith.constant 0 : i32
    %c0_i32_0 = arith.constant 0 : i32
    return %arg0, %c0_i32 : i32, i32
  }
}

</mosaic_0001>

<bundles_post_ra>
// kernel: tpu_custom_call.1
= control target key start
LH: loop header
LB: loop body
LE: loop exit
PB: predicated region body
PF: predicated region fallthrough
CT: control target
= control target key end

     0   :  { %10 = vsyncpa [#allocation3], 0  ;;  %s468_s0 = inlined_call_operand.vmem [shape: bf16[16,4], index: 0, kind: input, shape index: {}]   ;;  %s469_s1 = inlined_call_operand.vmem [shape: bf16[4,128], index: 1, kind: input, shape index: {}]   ;;  %s470_s2 = inlined_call_operand.hbm [shape: bf16[128,128], index: 2, kind: input, shape index: {}]   ;;  %s471_s3 = inlined_call_operand.hbm [shape: bf16[128,128], index: 3, kind: input, shape index: {}]   ;;  %s472_s4 = inlined_call_operand.vmem [shape: f32[3,128], index: 4, kind: input, shape index: {}]   ;;  %s473_s5 = inlined_call_operand.vmem [shape: f32[16,4], index: 5, kind: output, shape index: {}]  }
   0x1   :  { %s20_s20 = sshll.u32 %s470_s2, 4  ;;  %s21_s20 = int_to_ptr.hbm [resolvable:$true] %s20_s20 }
   0x2   :  { %11 = vsyncpa [#allocation5], 0  ;;  %s404_s21 = smov [#allocation2]   ;;  %s33_s25 = sshll.u32 %s471_s3, 4  ;;  %s34_s25 = int_to_ptr.hbm [resolvable:$true] %s33_s25 }
   0x3   :  { %s22_s22 = sshll.u32 %s404_s21, 4  ;;  %s405_s26 = smov 64   ;;  %s23_s22 = int_to_ptr.vmem [resolvable:$true] %s22_s22 }
   0x4   :  { %s406_s27 = smov 4   ;;  %s407_s28 = smov [#allocation4]  }
   0x5   :  { %28 = dma.hbm_to_vmem [thread:$0]  %s21_s20, 1024, %s23_s22, [#allocation3], %s405_s26, %s405_s26, %s406_s27  }
   0x6   :  { %s35_s29 = sshll.u32 %s407_s28, 4  ;;  %s36_s29 = int_to_ptr.vmem [resolvable:$true] %s35_s29 }
   0x7   :  { %41 = dma.hbm_to_vmem [thread:$0]  %s34_s25, 1024, %s36_s29, [#allocation5], %s405_s26, %s405_s26, %s406_s27  }
   0x8   :  { %400 = dma.done.wait [#allocation3], 1024  }
   0x9   :  { %401 = vsyncadd [#allocation3], 4294966272 }
   0xa   :  { %402 = dma.done.wait [#allocation5], 1024  }
   0xb   :  { %403 = vsyncadd [#allocation5], 4294966272  ;;  %vm67_vm0 = vcmask 1041408   ;;  %v55_v0 = vld [vmem:[%s469_s1] sm:$0x3]  ;;  %v336_v1 = vld [vmem:[#allocation2 + $0x38] sm:$0xff] }
   0xc   :  { %v69_v2 = vsel %vm67_vm0, %v55_v0, 0  ;;  %v328_v3 = vld [vmem:[%s468_s0] sm:$0xff]  ;;  %vm63_vm1 = vcmask 31744   ;;  %154 = vmatpush.bf16.msra.mxu1 %v336_v1  ;;  %v335_v4 = vld [vmem:[#allocation2 + $0x30] sm:$0xff]  ;;  %v334_v5 = vld [vmem:[#allocation2 + $0x28] sm:$0xff] }
   0xd   :  { %78 = vmatpush.bf16.msra.mxu0 %v69_v2  ;;  %v333_v6 = vld [vmem:[#allocation2 + $0x20] sm:$0xff]  ;;  %v332_v7 = vld [vmem:[#allocation2 + $0x18] sm:$0xff]  ;;  %v331_v8 = vld [vmem:[#allocation2 + $0x10] sm:$0xff] }
   0xe   :  { %v330_v9 = vld [vmem:[#allocation2 + $0x8] sm:$0xff]  ;;  %v329_v10 = vld [vmem:[#allocation2] sm:$0xff]  ;;  %v344_v11 = vld [vmem:[#allocation4 + $0x38] sm:$0xff] }
   0xf   :  { %237 = vmatpush.bf16.msra.mxu2 %v344_v11  ;;  %v343_v12 = vld [vmem:[#allocation4 + $0x30] sm:$0xff]  ;;  %v342_v13 = vld [vmem:[#allocation4 + $0x28] sm:$0xff]  ;;  %v341_v14 = vld [vmem:[#allocation4 + $0x20] sm:$0xff] }
  0x10   :  { %263 = vmatmul.msk.bf16.vlgmr.msra.gmra.mxu0 %vm63_vm1, %v328_v3  ;;  %155 = vmatpush.bf16.msra.mxu1 %v335_v4  ;;  %v349_v16 = vld [vmem:[%s472_s4] ss:$0 sm:$0xff]  ;;  %v340_v23 = vld [vmem:[#allocation4 + $0x18] sm:$0xff]  ;;  %v339_v24 = vld [vmem:[#allocation4 + $0x10] sm:$0xff] }
  0x11   :  { %v338_v25 = vld [vmem:[#allocation4 + $0x8] sm:$0xff]  ;;  %v337_v26 = vld [vmem:[#allocation4] sm:$0xff] }
  0x12   :  { %v350_v28 = vld [vmem:[%s472_s4 + $0x1] ss:$0 sm:$0xff]  ;;  %v351_v35 = vld [vmem:[%s472_s4 + $0x2] ss:$0 sm:$0xff] }
  0x13   :  { %238 = vmatpush.bf16.msra.mxu2 %v343_v12 }
  0x14   :  { %156 = vmatpush.bf16.msra.mxu1 %v334_v5 }
  0x17   :  { %239 = vmatpush.bf16.msra.mxu2 %v342_v13 }
  0x18   :  { %157 = vmatpush.bf16.msra.mxu1 %v333_v6 }
  0x1b   :  { %240 = vmatpush.bf16.msra.mxu2 %v341_v14 }
  0x1c   :  { %158 = vmatpush.bf16.msra.mxu1 %v332_v7 }
  0x1f   :  { %241 = vmatpush.bf16.msra.mxu2 %v340_v23 }
  0x20   :  { %159 = vmatpush.bf16.msra.mxu1 %v331_v8 }
  0x23   :  { %242 = vmatpush.bf16.msra.mxu2 %v339_v24 }
  0x24   :  { %160 = vmatpush.bf16.msra.mxu1 %v330_v9 }
  0x27   :  { %243 = vmatpush.bf16.msra.mxu2 %v338_v25 }
  0x28   :  { %161 = vmatpush.bf16.msra.mxu1 %v329_v10 }
  0x2b   :  { %244 = vmatpush.bf16.msra.mxu2 %v337_v26 }
  0x8d   :  { %v80_v15 = vpop.f32.mrf.mxu0 }
  0x8e   :  { %v81_v17 = vadd.f32 %v349_v16, %v80_v15 }
  0x90   :  { %v85_v20 = vmax.f32 %v81_v17, 0.0 }
  0x95   :  { %v82_v18 = vpop.f32.mrf.mxu0 }
  0x96   :  { %v83_v19 = vadd.f32 %v349_v16, %v82_v18 }
  0x98   :  { %v86_v21 = vmax.f32 %v83_v19, 0.0 }
  0x9a   :  { %v87_v22 = vpack.c.bf16 %v86_v21, %v85_v20 }
  0x9c   :  { %162 = vmatmul.bf16.vlgmr.msra.gmra.mxu1 %v87_v22 }
 0x119   :  { %v163_v27 = vpop.f32.mrf.mxu1 }
 0x11a   :  { %v164_v29 = vadd.f32 %v350_v28, %v163_v27 }
 0x11c   :  { %v168_v32 = vmax.f32 %v164_v29, 0.0 }
 0x121   :  { %v165_v30 = vpop.f32.mrf.mxu1 }
 0x122   :  { %v166_v31 = vadd.f32 %v350_v28, %v165_v30 }
 0x124   :  { %v169_v33 = vmax.f32 %v166_v31, 0.0 }
 0x126   :  { %v170_v34 = vpack.c.bf16 %v169_v33, %v168_v32 }
 0x128   :  { %245 = vmatmul.bf16.vlgmr.msra.gmra.mxu2 %v170_v34 }
 0x1ab   :  { %v246_v36 = vpop.f32.mrf.mxu2 }
 0x1ac   :  { %v247_v37 = vadd.f32 %v351_v35, %v246_v36 }
 0x1ae   :  { %251 = vst.msk [vmem:[%s473_s5] sm:$0xff] %vm63_vm1, %v247_v37 }
 0x1b3   :  { %v248_v38 = vpop.f32.mrf.mxu2 }
 0x1b4   :  { %v249_v39 = vadd.f32 %v351_v35, %v248_v38 }
 0x1b6   :  { %252 = vst.msk [vmem:[%s473_s5 + $0x8] sm:$0xff] %vm63_vm1, %v249_v39 }
 0x1b7   :  { %257 = vsyncpa [#allocation3], 1 }
 0x1b8   :  { %258 = vsyncpa [#allocation5], 1 }

</bundles_post_ra>
